<compile_context>
chip_gen: v7x
topology: tpu7x:2x2x1
jax: 0.10.0
libtpu: 0.0.40
codegen_flags: <defaults>
</compile_context>

<pallas_src>
import functools

import jax
import jax.numpy as jnp
from jax.experimental import pallas as pl
from jax.experimental.pallas import tpu as pltpu


def _elu_feature_map(x):
    # elu(x) + 1  ==  x + 1 for x > 0,  exp(x) for x <= 0   (alpha = 1)
    return jnp.where(x > 0, x + 1.0, jnp.exp(x))


def _fast_reciprocal(x):
    # EUP approx reciprocal (free slot) + one Newton step -> ~f32 accuracy.
    # The denominator is strictly positive here (elu+1 > 0, eps > 0).
    r = pl.reciprocal(x, approx=True)
    return r * (2.0 - x * r)


def _recurrent_step_kernel(q_ref, k_ref, v_ref, si_ref, zi_ref,
                           out_ref, si_out_ref, zi_out_ref, *, eps, d_chunk):
    """One decode step with an existing recurrent state (blocks of `rows`)."""
    phi_q = _elu_feature_map(q_ref[...].astype(jnp.float32))   # (rows, D)
    phi_k = _elu_feature_map(k_ref[...].astype(jnp.float32))   # (rows, D)
    v = v_ref[...].astype(jnp.float32)                         # (rows, M)
    zi = zi_ref[...].astype(jnp.float32)                       # (rows, D)

    # Fold the state update into the contractions so only the *old* state is
    # needed:  V = (phi_q.Si + (phi_q.phi_k) v) / (phi_q.Zi + phi_q.phi_k + eps)
    qk = jnp.sum(phi_q * phi_k, axis=-1, keepdims=True)               # (rows, 1)
    denom = jnp.sum(phi_q * zi, axis=-1, keepdims=True) + qk + eps    # (rows, 1)
    z = _fast_reciprocal(denom)

    zi_out_ref[...] = (zi + phi_k).astype(zi_out_ref.dtype)

    # Stream Si through in sublane-aligned D-chunks: each chunk is read once,
    # used for the numerator, rank-1 updated and stored directly to the output
    # block, so only a chunk-sized f32 temporary is live at a time.
    phi_q3 = phi_q[:, :, None]        # (rows, D, 1)
    phi_k3 = phi_k[:, :, None]        # (rows, D, 1)
    v3 = v[:, None, :]                # (rows, 1, M)

    D = q_ref.shape[1]
    num = qk * v                      # (rows, M) -- correction term of the fold
    for d0 in range(0, D, d_chunk):
        dc = min(d_chunk, D - d0)
        si_c = si_ref[:, d0:d0 + dc, :].astype(jnp.float32)        # (rows, dc, M)
        num = num + jnp.sum(phi_q3[:, d0:d0 + dc, :] * si_c, axis=1)
        si_out_ref[:, d0:d0 + dc, :] = (
            si_c + phi_k3[:, d0:d0 + dc, :] * v3).astype(si_out_ref.dtype)

    out_ref[...] = (num * z).astype(out_ref.dtype)


def _first_step_kernel(q_ref, k_ref, v_ref, out_ref, si_out_ref, zi_out_ref,
                       *, eps, d_chunk):
    """First decode step (info=None): the old state is zero, skip its read."""
    phi_q = _elu_feature_map(q_ref[...].astype(jnp.float32))
    phi_k = _elu_feature_map(k_ref[...].astype(jnp.float32))
    v = v_ref[...].astype(jnp.float32)

    qk = jnp.sum(phi_q * phi_k, axis=-1, keepdims=True)
    z = _fast_reciprocal(qk + eps)

    zi_out_ref[...] = phi_k.astype(zi_out_ref.dtype)
    out_ref[...] = (qk * v * z).astype(out_ref.dtype)

    phi_k3 = phi_k[:, :, None]
    v3 = v[:, None, :]
    D = q_ref.shape[1]
    for d0 in range(0, D, d_chunk):
        dc = min(d_chunk, D - d0)
        si_out_ref[:, d0:d0 + dc, :] = (
            phi_k3[:, d0:d0 + dc, :] * v3).astype(si_out_ref.dtype)


def _vmem_plan():
    """Return (vmem_limit_bytes, per-step block budget) for this generation."""
    cap = None
    try:
        cap = getattr(pltpu.get_tpu_info(), "vmem_capacity_bytes", None)
    except Exception:
        cap = None
    if cap is None or cap < 96 * 1024 * 1024:
        # v7x-class (64 MiB per TensorCore) or unknown: leave headroom for
        # Mosaic internal scratch, semaphores and spill slots.
        return 40 * 1024 * 1024, 20 * 1024 * 1024
    # 128 MiB VMEM parts (v5e/v6e).  v5e's default scoped limit is only
    # 16 MiB, so the explicit limit matters there.
    return 64 * 1024 * 1024, 28 * 1024 * 1024


def _pick_block_rows(G, D, M, *, si_in_bytes, si_out_bytes, io_bytes, d_chunk,
                     vmem_budget_bytes):
    """Rows of the flattened (B*N) axis processed per grid step.

    Sized for (a) the VMEM budget (Si blocks are double-buffered on input and
    output), (b) the ~1-4 MiB HBM DMA sweet spot for the dominant (rows, D, M)
    state stream, and (c) >= ~4 grid steps when there is enough work so the
    input DMA of step i+1 overlaps the writeback of step i (and both v7x
    TensorCores get blocks).  The result is a multiple of 8 (sublane) or the
    full axis, as required by the (8, 128) block constraint; the grid uses
    pl.cdiv so G need not be divisible.
    """
    LANE, SUB = 128, 8
    m_pad = -(-M // LANE) * LANE          # M < 128 is lane-padded in VMEM
    d_pad = -(-D // LANE) * LANE

    si_row = D * m_pad
    small_row = 3 * d_pad + 2 * m_pad     # q, k, zi rows + v, out rows
    per_row = 2 * (si_in_bytes + si_out_bytes) * si_row       # pipelined Si bufs
    per_row += 2 * 4 * d_chunk * m_pad                         # streamed f32 chunks
    per_row += (2 * io_bytes + 8 * 4) * small_row              # small bufs + temps
    vmem_rows = max(1, vmem_budget_bytes // max(1, per_row))

    state_row_bytes = D * M * max(si_in_bytes, si_out_bytes, 1)
    sweet_rows = max(SUB, (2 * 1024 * 1024) // state_row_bytes)

    rows = min(vmem_rows, sweet_rows)
    if G >= 4 * SUB:
        rows = min(rows, max(SUB, G // 4))
    if rows >= G:
        return G
    return max(SUB, (rows // SUB) * SUB)


def recurrent_linear_attention(query, key, value, info=None, eps=1e-6):
    """One recurrent step of causal linear attention.

    query/key: (B, N, D); value: (B, N, M).
    Returns (V, [Si_new, Zi_new]) with V: (B, N, M), Si: (B, N, D, M),
    Zi: (B, N, D) -- same layout as the PyTorch module.
    """
    B, N, D = query.shape
    _, _, M = value.shape
    G = B * N

    q2 = query.reshape(G, D)
    k2 = key.reshape(G, D)
    v2 = value.reshape(G, M)

    out_dtype = query.dtype
    d_chunk = 8 if D % 8 == 0 else D
    vmem_limit, vmem_budget = _vmem_plan()
    io_bytes = max(jnp.dtype(query.dtype).itemsize,
                   jnp.dtype(value.dtype).itemsize)

    q_bytes = G * D * jnp.dtype(query.dtype).itemsize
    k_bytes = G * D * jnp.dtype(key.dtype).itemsize
    v_bytes = G * M * jnp.dtype(value.dtype).itemsize
    o_bytes = G * M * jnp.dtype(out_dtype).itemsize

    if info is None:
        # First decode step: the old state is identically zero, so never
        # materialize or read it.  The recurrent state is emitted in float32
        # regardless of the activation dtype to avoid re-quantization drift
        # over long decode sequences.
        state_dtype = jnp.float32
        s_it = jnp.dtype(state_dtype).itemsize
        rows = _pick_block_rows(G, D, M, si_in_bytes=0, si_out_bytes=s_it,
                                io_bytes=io_bytes, d_chunk=d_chunk,
                                vmem_budget_bytes=vmem_budget)
        grid = (pl.cdiv(G, rows),)
        cost = pl.CostEstimate(
            flops=int(2 * G * D * M + 10 * G * D + 6 * G * M),
            transcendentals=int(2 * G * D + G),
            bytes_accessed=int(q_bytes + k_bytes + v_bytes + o_bytes
                               + G * D * M * s_it + G * D * s_it),
        )
        V, Si_new, Zi_new = pl.pallas_call(
            functools.partial(_first_step_kernel, eps=eps, d_chunk=d_chunk),
            out_shape=(
                jax.ShapeDtypeStruct((G, M), out_dtype),
                jax.ShapeDtypeStruct((G, D, M), state_dtype),
                jax.ShapeDtypeStruct((G, D), state_dtype),
            ),
            grid_spec=pltpu.PrefetchScalarGridSpec(
                num_scalar_prefetch=0,
                grid=grid,
                in_specs=[
                    pl.BlockSpec((rows, D), lambda g: (g, 0)),        # query
                    pl.BlockSpec((rows, D), lambda g: (g, 0)),        # key
                    pl.BlockSpec((rows, M), lambda g: (g, 0)),        # value
                ],
                out_specs=(
                    pl.BlockSpec((rows, M), lambda g: (g, 0)),        # V
                    pl.BlockSpec((rows, D, M), lambda g: (g, 0, 0)),  # Si_new
                    pl.BlockSpec((rows, D), lambda g: (g, 0)),        # Zi_new
                ),
            ),
            compiler_params=pltpu.CompilerParams(
                dimension_semantics=("parallel",),
                vmem_limit_bytes=vmem_limit,
            ),
            cost_estimate=cost,
        )(q2, k2, v2)
    else:
        Si, Zi = info
        if Si.shape[0] != B:
            raise ValueError("The batch size changed during iteration")
        si2 = Si.reshape(G, D, M)
        zi2 = Zi.reshape(G, D)
        si_it = jnp.dtype(Si.dtype).itemsize
        zi_it = jnp.dtype(Zi.dtype).itemsize
        rows = _pick_block_rows(G, D, M, si_in_bytes=si_it, si_out_bytes=si_it,
                                io_bytes=io_bytes, d_chunk=d_chunk,
                                vmem_budget_bytes=vmem_budget)
        grid = (pl.cdiv(G, rows),)
        cost = pl.CostEstimate(
            flops=int(4 * G * D * M + 14 * G * D + 6 * G * M),
            transcendentals=int(2 * G * D + G),
            bytes_accessed=int(q_bytes + k_bytes + v_bytes + o_bytes
                               + 2 * G * D * M * si_it + 2 * G * D * zi_it),
        )
        V, Si_new, Zi_new = pl.pallas_call(
            functools.partial(_recurrent_step_kernel, eps=eps, d_chunk=d_chunk),
            out_shape=(
                jax.ShapeDtypeStruct((G, M), out_dtype),
                jax.ShapeDtypeStruct((G, D, M), Si.dtype),
                jax.ShapeDtypeStruct((G, D), Zi.dtype),
            ),
            grid_spec=pltpu.PrefetchScalarGridSpec(
                num_scalar_prefetch=0,
                grid=grid,
                in_specs=[
                    pl.BlockSpec((rows, D), lambda g: (g, 0)),        # query
                    pl.BlockSpec((rows, D), lambda g: (g, 0)),        # key
                    pl.BlockSpec((rows, M), lambda g: (g, 0)),        # value
                    pl.BlockSpec((rows, D, M), lambda g: (g, 0, 0)),  # Si
                    pl.BlockSpec((rows, D), lambda g: (g, 0)),        # Zi
                ],
                out_specs=(
                    pl.BlockSpec((rows, M), lambda g: (g, 0)),        # V
                    pl.BlockSpec((rows, D, M), lambda g: (g, 0, 0)),  # Si_new
                    pl.BlockSpec((rows, D), lambda g: (g, 0)),        # Zi_new
                ),
            ),
            # Update the recurrent state in place each decode step (donate
            # Si/Zi under jit to realize the saving; XLA inserts a defensive
            # copy otherwise).
            input_output_aliases={3: 1, 4: 2},
            compiler_params=pltpu.CompilerParams(
                dimension_semantics=("parallel",),
                vmem_limit_bytes=vmem_limit,
            ),
            cost_estimate=cost,
        )(q2, k2, v2, si2, zi2)

    return (V.reshape(B, N, M),
            [Si_new.reshape(B, N, D, M), Zi_new.reshape(B, N, D)])


def _reference(query, key, value, info=None, eps=1e-6):
    B, N, D = query.shape
    _, _, M = value.shape
    if info is None:
        Si = jnp.zeros((B, N, D, M), jnp.float32)
        Zi = jnp.zeros((B, N, D), jnp.float32)
    else:
        Si, Zi = info
    Q = _elu_feature_map(query)
    K = _elu_feature_map(key)
    Zi = Zi + K
    Si = Si + jnp.einsum("bnd,bnm->bndm", K, value)
    Z = 1.0 / (jnp.einsum("bnd,bnd->bn", Q, Zi) + eps)
    V = jnp.einsum("bnd,bndm,bn->bnm", Q, Si, Z)
    return V, [Si, Zi]


if __name__ == "__main__":
    def run_case(B, N, D, M, seed=0):
        kq, kk, kv = jax.random.split(jax.random.PRNGKey(seed), 3)
        query = jax.random.normal(kq, (B, N, D), jnp.float32)
        key_t = jax.random.normal(kk, (B, N, D), jnp.float32)
        value = jax.random.normal(kv, (B, N, M), jnp.float32)

        step = jax.jit(recurrent_linear_attention)

        # First step (info=None -> zero state), like the module's forward.
        V, (Si, Zi) = step(query, key_t, value)
        jax.block_until_ready((V, Si, Zi))

        # Second step reusing the recurrent state (stateful decode path).
        V2, (Si2, Zi2) = step(query, key_t, value, [Si, Zi])
        jax.block_until_ready((V2, Si2, Zi2))

        # Validate against a plain-JAX reference.
        Vr, (Sir, Zir) = _reference(query, key_t, value)
        V2r, (Si2r, Zi2r) = _reference(query, key_t, value, (Sir, Zir))
        for got, want in [(V, Vr), (Si, Sir), (Zi, Zir),
                          (V2, V2r), (Si2, Si2r), (Zi2, Zi2r)]:
            assert jnp.allclose(got, want, atol=1e-5, rtol=1e-5), (B, N, D, M)

    # Small shape matching the module's decode step.
    run_case(B=2, N=8, D=32, M=64)
    # Flattened batch (B*N = 176) not divisible by the chosen block rows:
    # exercises the cdiv grid / partial last block path.
    run_case(B=4, N=44, D=32, M=64)

    print("KERNEL_OK")
</pallas_src>

<mosaic_0001>
module attributes {stable_mosaic.version = 11 : i64} {
  func.func @_first_step_kernel(%arg0: i32, %arg1: memref<16x32xf32, #tpu.memory_space<vmem>>, %arg2: memref<16x32xf32, #tpu.memory_space<vmem>>, %arg3: memref<16x64xf32, #tpu.memory_space<vmem>>, %arg4: memref<16x64xf32, #tpu.memory_space<vmem>>, %arg5: memref<16x32x64xf32, #tpu.memory_space<vmem>>, %arg6: memref<16x32xf32, #tpu.memory_space<vmem>>) attributes {dimension_semantics = [#tpu.dimension_semantics<parallel>], iteration_bounds = array<i64: 1>, scalar_prefetch = 0 : i64, scratch_operands = 0 : i64, tpu.core_type = #tpu.core_type<tc>, window_params = [{transform_indices = @transform_0, window_bounds = array<i64: 16, 32>}, {transform_indices = @transform_1, window_bounds = array<i64: 16, 32>}, {transform_indices = @transform_2, window_bounds = array<i64: 16, 64>}, {transform_indices = @transform_3, window_bounds = array<i64: 16, 64>}, {transform_indices = @transform_4, window_bounds = array<i64: 16, 32, 64>}, {transform_indices = @transform_5, window_bounds = array<i64: 16, 32>}]} {
    %c0 = arith.constant 0 : index
    %c0_0 = arith.constant 0 : index
    %0 = vector.load %arg1[%c0, %c0_0] : memref<16x32xf32, #tpu.memory_space<vmem>>, vector<16x32xf32>
    %cst = arith.constant 0.000000e+00 : f32
    %1 = vector.broadcast %cst : f32 to vector<16x32xf32>
    %2 = arith.cmpf ogt, %0, %1 : vector<16x32xf32>
    %cst_1 = arith.constant 1.000000e+00 : f32
    %3 = vector.broadcast %cst_1 : f32 to vector<16x32xf32>
    %4 = arith.addf %0, %3 : vector<16x32xf32>
    %5 = math.exp %0 : vector<16x32xf32>
    %6 = arith.select %2, %4, %5 : vector<16x32xi1>, vector<16x32xf32>
    %c0_2 = arith.constant 0 : index
    %c0_3 = arith.constant 0 : index
    %7 = vector.load %arg2[%c0_2, %c0_3] : memref<16x32xf32, #tpu.memory_space<vmem>>, vector<16x32xf32>
    %cst_4 = arith.constant 0.000000e+00 : f32
    %8 = vector.broadcast %cst_4 : f32 to vector<16x32xf32>
    %9 = arith.cmpf ogt, %7, %8 : vector<16x32xf32>
    %cst_5 = arith.constant 1.000000e+00 : f32
    %10 = vector.broadcast %cst_5 : f32 to vector<16x32xf32>
    %11 = arith.addf %7, %10 : vector<16x32xf32>
    %12 = math.exp %7 : vector<16x32xf32>
    %13 = arith.select %9, %11, %12 : vector<16x32xi1>, vector<16x32xf32>
    %c0_6 = arith.constant 0 : index
    %c0_7 = arith.constant 0 : index
    %14 = vector.load %arg3[%c0_6, %c0_7] : memref<16x64xf32, #tpu.memory_space<vmem>>, vector<16x64xf32>
    %15 = arith.mulf %6, %13 : vector<16x32xf32>
    %cst_8 = arith.constant dense<0.000000e+00> : vector<16xf32>
    %16 = vector.multi_reduction <add>, %15, %cst_8 [1] : vector<16x32xf32> to vector<16xf32>
    %17 = vector.shape_cast %16 : vector<16xf32> to vector<16x1xf32>
    %cst_9 = arith.constant 9.99999997E-7 : f32
    %18 = vector.broadcast %cst_9 : f32 to vector<16x1xf32>
    %19 = arith.addf %17, %18 : vector<16x1xf32>
    %20 = tpu.reciprocal %19 {approx = true} : vector<16x1xf32> -> vector<16x1xf32>
    %21 = arith.mulf %19, %20 : vector<16x1xf32>
    %cst_10 = arith.constant 2.000000e+00 : f32
    %22 = vector.broadcast %cst_10 : f32 to vector<16x1xf32>
    %23 = arith.subf %22, %21 : vector<16x1xf32>
    %24 = arith.mulf %20, %23 : vector<16x1xf32>
    %c0_11 = arith.constant 0 : index
    %c0_12 = arith.constant 0 : index
    %25 = vector.load %arg6[%c0_11, %c0_12] : memref<16x32xf32, #tpu.memory_space<vmem>>, vector<16x32xf32>
    tpu.vector_store %arg6[%c0_11, %c0_12], %13 {strides = array<i32>} : memref<16x32xf32, #tpu.memory_space<vmem>>, vector<16x32xf32>,
    %26 = vector.broadcast %17 : vector<16x1xf32> to vector<16x64xf32>
    %27 = arith.mulf %26, %14 : vector<16x64xf32>
    %28 = vector.broadcast %24 : vector<16x1xf32> to vector<16x64xf32>
    %29 = arith.mulf %27, %28 : vector<16x64xf32>
    %c0_13 = arith.constant 0 : index
    %c0_14 = arith.constant 0 : index
    %30 = vector.load %arg4[%c0_13, %c0_14] : memref<16x64xf32, #tpu.memory_space<vmem>>, vector<16x64xf32>
    tpu.vector_store %arg4[%c0_13, %c0_14], %29 {strides = array<i32>} : memref<16x64xf32, #tpu.memory_space<vmem>>, vector<16x64xf32>,
    %31 = vector.shape_cast %13 : vector<16x32xf32> to vector<16x32x1xf32>
    %32 = vector.shape_cast %14 : vector<16x64xf32> to vector<16x1x64xf32>
    %33 = vector.extract_strided_slice %31 {offsets = [0, 0, 0], sizes = [16, 8, 1], strides = [1, 1, 1]} : vector<16x32x1xf32> to vector<16x8x1xf32>
    %34 = vector.broadcast %33 : vector<16x8x1xf32> to vector<16x8x64xf32>
    %35 = vector.broadcast %32 : vector<16x1x64xf32> to vector<16x8x64xf32>
    %36 = arith.mulf %34, %35 : vector<16x8x64xf32>
    %c0_15 = arith.constant 0 : index
    %c0_16 = arith.constant 0 : index
    %c0_17 = arith.constant 0 : index
    %37 = vector.load %arg5[%c0_15, %c0_16, %c0_17] : memref<16x32x64xf32, #tpu.memory_space<vmem>>, vector<16x8x64xf32>
    tpu.vector_store %arg5[%c0_15, %c0_16, %c0_17], %36 {strides = array<i32>} : memref<16x32x64xf32, #tpu.memory_space<vmem>>, vector<16x8x64xf32>,
    %38 = vector.extract_strided_slice %31 {offsets = [0, 8, 0], sizes = [16, 8, 1], strides = [1, 1, 1]} : vector<16x32x1xf32> to vector<16x8x1xf32>
    %39 = vector.broadcast %38 : vector<16x8x1xf32> to vector<16x8x64xf32>
    %40 = vector.broadcast %32 : vector<16x1x64xf32> to vector<16x8x64xf32>
    %41 = arith.mulf %39, %40 : vector<16x8x64xf32>
    %c0_18 = arith.constant 0 : index
    %c8 = arith.constant 8 : index
    %c0_19 = arith.constant 0 : index
    %42 = vector.load %arg5[%c0_18, %c8, %c0_19] : memref<16x32x64xf32, #tpu.memory_space<vmem>>, vector<16x8x64xf32>
    tpu.vector_store %arg5[%c0_18, %c8, %c0_19], %41 {strides = array<i32>} : memref<16x32x64xf32, #tpu.memory_space<vmem>>, vector<16x8x64xf32>,
    %43 = vector.extract_strided_slice %31 {offsets = [0, 16, 0], sizes = [16, 8, 1], strides = [1, 1, 1]} : vector<16x32x1xf32> to vector<16x8x1xf32>
    %44 = vector.broadcast %43 : vector<16x8x1xf32> to vector<16x8x64xf32>
    %45 = vector.broadcast %32 : vector<16x1x64xf32> to vector<16x8x64xf32>
    %46 = arith.mulf %44, %45 : vector<16x8x64xf32>
    %c0_20 = arith.constant 0 : index
    %c16 = arith.constant 16 : index
    %c0_21 = arith.constant 0 : index
    %47 = vector.load %arg5[%c0_20, %c16, %c0_21] : memref<16x32x64xf32, #tpu.memory_space<vmem>>, vector<16x8x64xf32>
    tpu.vector_store %arg5[%c0_20, %c16, %c0_21], %46 {strides = array<i32>} : memref<16x32x64xf32, #tpu.memory_space<vmem>>, vector<16x8x64xf32>,
    %48 = vector.extract_strided_slice %31 {offsets = [0, 24, 0], sizes = [16, 8, 1], strides = [1, 1, 1]} : vector<16x32x1xf32> to vector<16x8x1xf32>
    %49 = vector.broadcast %48 : vector<16x8x1xf32> to vector<16x8x64xf32>
    %50 = vector.broadcast %32 : vector<16x1x64xf32> to vector<16x8x64xf32>
    %51 = arith.mulf %49, %50 : vector<16x8x64xf32>
    %c0_22 = arith.constant 0 : index
    %c24 = arith.constant 24 : index
    %c0_23 = arith.constant 0 : index
    %52 = vector.load %arg5[%c0_22, %c24, %c0_23] : memref<16x32x64xf32, #tpu.memory_space<vmem>>, vector<16x8x64xf32>
    tpu.vector_store %arg5[%c0_22, %c24, %c0_23], %51 {strides = array<i32>} : memref<16x32x64xf32, #tpu.memory_space<vmem>>, vector<16x8x64xf32>,
    return
  }
  func.func @transform_0(%arg0: i32) -> (i32, i32) {
    %c0_i32 = arith.constant 0 : i32
    %c0_i32_0 = arith.constant 0 : i32
    return %arg0, %c0_i32 : i32, i32
  }
  func.func @transform_1(%arg0: i32) -> (i32, i32) {
    %c0_i32 = arith.constant 0 : i32
    %c0_i32_0 = arith.constant 0 : i32
    return %arg0, %c0_i32 : i32, i32
  }
  func.func @transform_2(%arg0: i32) -> (i32, i32) {
    %c0_i32 = arith.constant 0 : i32
    %c0_i32_0 = arith.constant 0 : i32
    return %arg0, %c0_i32 : i32, i32
  }
  func.func @transform_3(%arg0: i32) -> (i32, i32) {
    %c0_i32 = arith.constant 0 : i32
    %c0_i32_0 = arith.constant 0 : i32
    return %arg0, %c0_i32 : i32, i32
  }
  func.func @transform_4(%arg0: i32) -> (i32, i32, i32) {
    %c0_i32 = arith.constant 0 : i32
    %c0_i32_0 = arith.constant 0 : i32
    %c0_i32_1 = arith.constant 0 : i32
    return %arg0, %c0_i32, %c0_i32_0 : i32, i32, i32
  }
  func.func @transform_5(%arg0: i32) -> (i32, i32) {
    %c0_i32 = arith.constant 0 : i32
    %c0_i32_0 = arith.constant 0 : i32
    return %arg0, %c0_i32 : i32, i32
  }
}

</mosaic_0001>

<bundles_post_ra>
// kernel: recurrent_linear_attention.1
= control target key start
LH: loop header
LB: loop body
LE: loop exit
PB: predicated region body
PF: predicated region fallthrough
CT: control target
= control target key end

     0   :  { %11 = vsyncpa [#allocation3], 0  ;;  %s1200_s0 = inlined_call_operand.hbm [shape: f32[16,32], index: 0, kind: input, shape index: {}]   ;;  %s1201_s1 = inlined_call_operand.hbm [shape: f32[16,32], index: 1, kind: input, shape index: {}]   ;;  %s1202_s2 = inlined_call_operand.vmem [shape: f32[16,64], index: 2, kind: input, shape index: {}]   ;;  %s1203_s3 = inlined_call_operand.hbm [shape: f32[16,64], index: 3, kind: output, shape index: {0}]   ;;  %s1204_s4 = inlined_call_operand.hbm [shape: f32[16,32,64], index: 4, kind: output, shape index: {1}]   ;;  %s1205_s5 = inlined_call_operand.hbm [shape: f32[16,32], index: 5, kind: output, shape index: {2}]  }
   0x1   :  { %12 = vsyncpa [#allocation6], 0 }
   0x2   :  { %13 = vsyncpa [#allocation4], 0 }
   0x3   :  { %14 = vsyncpa [#allocation9], 0  ;;  %s901_s18 = smov [#allocation2]   ;;  %s783_s22 = scalar_lea.hbm %s1200_s0, 256 }
   0x4   :  { %s20_s19 = sshll.u32 %s901_s18, 4  ;;  %p784_p0 = scmp.ne.s32.totalorder %s1200_s0, %s783_s22  ;;  %s21_s19 = int_to_ptr.vmem [resolvable:$true] %s20_s19 }
   0x5   :  { %p787_p1 = scmp.lt.u32.totalorder %s783_s22, %s1200_s0 }
   0x7   :  { %p789_p2 = pnand %p787_p1, %p784_p0 }
   0x9   :  { %792 = shalt.err (!%p789_p2)
}
   0xa   :  { %s793_s27 = scalar_lea.vmem %s21_s19, 256  ;;  %p798_p4 = scmp.lt.s32.totalorder %s21_s19, %s21_s19 }
   0xb   :  { %p794_p3 = scmp.ne.s32.totalorder %s21_s19, %s793_s27  ;;  %p799_p5 = scmp.lt.s32.totalorder %s793_s27, %s793_s27 }
   0xd   :  { %p800_p6 = por %p799_p5, %p798_p4 }
   0xf   :  { %p801_p7 = pnand %p800_p6, %p794_p3 }
  0x11   :  { %804 = shalt.err (!%p801_p7)
}
  0x12   :  { %s902_s28 = smov 128   ;;  %s903_s29 = smov 8  }
  0x13   :  { %26 = dma.hbm_to_vmem [thread:$0]  %s1200_s0, 256, %s21_s19, [#allocation3], %s902_s28, %s902_s28, %s903_s29  }
  0x14   :  { %s904_s7 = smov [#allocation5]   ;;  %s805_s11 = scalar_lea.hbm %s1201_s1, 256 }
  0x15   :  { %s32_s8 = sshll.u32 %s904_s7, 4  ;;  %p806_p8 = scmp.ne.s32.totalorder %s1201_s1, %s805_s11  ;;  %s33_s8 = int_to_ptr.vmem [resolvable:$true] %s32_s8 }
  0x16   :  { %p809_p9 = scmp.lt.u32.totalorder %s805_s11, %s1201_s1 }
  0x18   :  { %p811_p10 = pnand %p809_p9, %p806_p8 }
  0x1a   :  { %814 = shalt.err (!%p811_p10)
}
  0x1b   :  { %s815_s16 = scalar_lea.vmem %s33_s8, 256  ;;  %p820_p12 = scmp.lt.s32.totalorder %s33_s8, %s33_s8 }
  0x1c   :  { %p816_p11 = scmp.ne.s32.totalorder %s33_s8, %s815_s16  ;;  %p821_p13 = scmp.lt.s32.totalorder %s815_s16, %s815_s16 }
  0x1e   :  { %p822_p0 = por %p821_p13, %p820_p12 }
  0x20   :  { %p823_p1 = pnand %p822_p0, %p816_p11 }
  0x22   :  { %826 = shalt.err (!%p823_p1)
}
  0x23   :  { %38 = dma.hbm_to_vmem [thread:$0]  %s1201_s1, 256, %s33_s8, [#allocation6], %s902_s28, %s902_s28, %s903_s29  }
  0x24   :  { %893 = dma.done.wait [#allocation3], 256  }
  0x25   :  { %894 = vsyncadd [#allocation3], 4294967040 }
  0x26   :  { %895 = dma.done.wait [#allocation6], 256  }
  0x27   :  { %896 = vsyncadd [#allocation6], 4294967040  ;;  %v47_v0 = vld [vmem:[#allocation2] sm:$0xff]  ;;  %v59_v1 = vld [vmem:[#allocation5] sm:$0xff]  ;;  %v101_v8 = vlaneseq  ;;  %vm75_vm4 = vcmask 261120   ;;  %vm98_vm5 = vcmask 523264  }
  0x28   :  { %v48_v2 = vld [vmem:[#allocation2 + $0x8] sm:$0xff]  ;;  %v53_v3 = vmul.f32 1.442695, %v47_v0  ;;  %v60_v4 = vld [vmem:[#allocation5 + $0x8] sm:$0xff]  ;;  %v65_v5 = vmul.f32 1.442695, %v59_v1 }
  0x29   :  { %v55_v6 = vmul.f32 1.442695, %v48_v2  ;;  %v67_v7 = vmul.f32 1.442695, %v60_v4  ;;  %v969_v9 = vshrl.u32 %v101_v8, 7  ;;  %v51_v10 = vadd.f32 1.0, %v47_v0 }
  0x2a   :  { %771 = vpow2.f32 %v53_v3  ;;  %vm49_vm0 = vcmp.gt.f32.partialorder %v47_v0, 0.0  ;;  %v63_v11 = vadd.f32 1.0, %v59_v1  ;;  %vm61_vm1 = vcmp.gt.f32.partialorder %v59_v1, 0.0  ;;  %v1004_v54 = vld [vmem:[%s1202_s2] sm:$0xff]  ;;  %s906_s21 = smov [#allocation7]  }
  0x2b   :  { %773 = vpow2.f32 %v65_v5  ;;  %v52_v12 = vadd.f32 1.0, %v48_v2  ;;  %v972_v13 = vsub.s32 0, %v969_v9  ;;  %vm50_vm2 = vcmp.gt.f32.partialorder %v48_v2, 0.0  ;;  %s718_s22 = sshll.u32 %s906_s21, 4  ;;  %s719_s22 = int_to_ptr.vmem [resolvable:$true] %s718_s22 }
  0x2c   :  { %775 = vpow2.f32 %v55_v6  ;;  %v64_v15 = vadd.f32 1.0, %v60_v4  ;;  %vm62_vm3 = vcmp.gt.f32.partialorder %v60_v4, 0.0  ;;  %v236_v20 = vsub.s32 7, %v969_v9  ;;  %p832_p3 = scmp.lt.s32.totalorder %s719_s22, %s719_s22 }
  0x2d   :  { %777 = vpow2.f32 %v67_v7  ;;  %v122_v26 = vsub.s32 1, %v969_v9  ;;  %v141_v27 = vsub.s32 2, %v969_v9  ;;  %v160_v28 = vsub.s32 3, %v969_v9 }
  0x2e   :  { %v179_v31 = vsub.s32 4, %v969_v9  ;;  %v198_v32 = vsub.s32 5, %v969_v9  ;;  %v217_v33 = vsub.s32 6, %v969_v9  ;;  %v905_v50 = vmov 1966171168  }
  0x2f   :  { %v409_v51 = vunpack.c.l.s4 %v905_v50 }
  0x31   :  { %v410_v52 = vunpack.c.0.s8 %v409_v51 }
  0x33   :  { %v998_v53 = vsub.s32 %v410_v52, %v969_v9 }
  0x34   :  { %v772_v14 = vpop.eup %771 }
  0x35   :  { %v774_v16 = vpop.eup %773  ;;  %v57_v17 = vsel %vm49_vm0, %v51_v10, %v772_v14  ;;  %v414_v55 = vrot.slane %v1004_v54, %v998_v53 }
  0x36   :  { %v776_v18 = vpop.eup %775  ;;  %v69_v19 = vsel %vm61_vm1, %v63_v11, %v774_v16 }
  0x37   :  { %v778_v21 = vpop.eup %777  ;;  %v73_v22 = vmul.f32 %v69_v19, %v57_v17  ;;  %92 = vst.msk [vmem:[#allocation10] sm:$0xff] %vm75_vm4, %v69_v19  ;;  %v58_v23 = vsel %vm50_vm2, %v52_v12, %v776_v18  ;;  %v104_v24 = vrot.slane %v69_v19, %v972_v13  ;;  %v237_v34 = vrot.slane %v69_v19, %v236_v20 }
  0x38   :  { %v70_v25 = vsel %vm62_vm3, %v64_v15, %v778_v21  ;;  %v123_v42 = vrot.slane %v69_v19, %v122_v26  ;;  %v142_v44 = vrot.slane %v69_v19, %v141_v27  ;;  %v161_v45 = vrot.slane %v69_v19, %v160_v28 }
  0x39   :  { %v76_v29 = vsel %vm75_vm4, %v73_v22, 0.0  ;;  %v74_v30 = vmul.f32 %v70_v25, %v58_v23  ;;  %93 = vst.msk [vmem:[#allocation10 + $0x8] sm:$0xff] %vm75_vm4, %v70_v25  ;;  %106 = vbcast.lane.b32.xlu1 %v104_v24, 256  ;;  %v275_v35 = vrot.slane %v70_v25, %v122_v26  ;;  %v294_v36 = vrot.slane %v70_v25, %v141_v27 }
  0x3a   :  { %77 = vadd.xlane.f32.xlu0 %v76_v29  ;;  %v986_v38 = vrot.slane %v70_v25, %v160_v28  ;;  %v988_v39 = vrot.slane %v70_v25, %v179_v31  ;;  %v990_v40 = vrot.slane %v70_v25, %v198_v32  ;;  %v992_v41 = vrot.slane %v70_v25, %v217_v33 }
  0x3b   :  { %v79_v37 = vsel %vm75_vm4, %v74_v30, 0.0  ;;  %v994_v43 = vrot.slane %v70_v25, %v236_v20  ;;  %v180_v46 = vrot.slane %v69_v19, %v179_v31  ;;  %v199_v47 = vrot.slane %v69_v19, %v198_v32 }
  0x3c   :  { %v218_v48 = vrot.slane %v69_v19, %v217_v33  ;;  %v256_v49 = vrot.slane %v70_v25, %v972_v13  ;;  %v430_v56 = vrot.slane %v414_v55, %v998_v53  ;;  %v422_v60 = vcombine.high %v414_v55, %v414_v55 }
  0x3d   :  { %110 = vbcast.lane.b32.xlu1 %v104_v24, 264  ;;  %v407_v19 = vcombine.high %v1004_v54, %v1004_v54 }
  0x3e   :  { %80 = vadd.xlane.f32.xlu0 %v79_v37  ;;  %v508_v57 = vrot.slane %v430_v56, %v972_v13  ;;  %v444_v63 = vrot.slane %v422_v60, %v998_v53  ;;  %v452_v9 = vcombine.high %v430_v56, %v430_v56 }
  0x3f   :  { %v421_v25 = vrot.slane %v407_v19, %v998_v53 }
  0x40   :  { %v512_v2 = vrot.slane %v444_v63, %v972_v13  ;;  %v516_v12 = vrot.slane %v452_v9, %v972_v13  ;;  %v454_v18 = vcombine.high %v444_v63, %v444_v63 }
  0x41   :  { %118 = vbcast.lane.b32.xlu1 %v104_v24, 280  ;;  %v1046_v30 = vrot.slane %v421_v25, %v998_v53  ;;  %v423_v37 = vcombine.high %v421_v25, %v421_v25 }
  0x45   :  { %125 = vbcast.lane.b32.xlu1 %v123_v42, 256 }
  0x49   :  { %129 = vbcast.lane.b32.xlu1 %v123_v42, 264 }
  0x4d   :  { %133 = vbcast.lane.b32.xlu1 %v123_v42, 272 }
  0x51   :  { %137 = vbcast.lane.b32.xlu1 %v123_v42, 280 }
  0x54   :  { %114 = vbcast.lane.b32.xlu0 %v104_v24, 272  ;;  %v520_v24 = vrot.slane %v454_v18, %v972_v13 }
  0x55   :  { %144 = vbcast.lane.b32.xlu1 %v142_v44, 256 }
  0x58   :  { %148 = vbcast.lane.b32.xlu0 %v142_v44, 264 }
  0x59   :  { %152 = vbcast.lane.b32.xlu1 %v142_v44, 272 }
  0x5c   :  { %156 = vbcast.lane.b32.xlu0 %v142_v44, 280 }
  0x5d   :  { %163 = vbcast.lane.b32.xlu1 %v161_v45, 256 }
  0x60   :  { %167 = vbcast.lane.b32.xlu0 %v161_v45, 264 }
  0x61   :  { %171 = vbcast.lane.b32.xlu1 %v161_v45, 272 }
  0x64   :  { %175 = vbcast.lane.b32.xlu0 %v161_v45, 280  ;;  %v1058_v45 = vrot.slane %v423_v37, %v998_v53 }
  0x65   :  { %182 = vbcast.lane.b32.xlu1 %v180_v46, 256 }
  0x68   :  { %186 = vbcast.lane.b32.xlu0 %v180_v46, 264 }
  0x69   :  { %190 = vbcast.lane.b32.xlu1 %v180_v46, 272 }
  0x6c   :  { %194 = vbcast.lane.b32.xlu0 %v180_v46, 280 }
  0x6d   :  { %201 = vbcast.lane.b32.xlu1 %v199_v47, 256 }
  0x70   :  { %205 = vbcast.lane.b32.xlu0 %v199_v47, 264 }
  0x71   :  { %209 = vbcast.lane.b32.xlu1 %v199_v47, 272 }
  0x74   :  { %213 = vbcast.lane.b32.xlu0 %v199_v47, 280 }
  0x75   :  { %220 = vbcast.lane.b32.xlu1 %v218_v48, 256 }
  0x78   :  { %224 = vbcast.lane.b32.xlu0 %v218_v48, 264 }
  0x79   :  { %228 = vbcast.lane.b32.xlu1 %v218_v48, 272 }
  0x7c   :  { %232 = vbcast.lane.b32.xlu0 %v218_v48, 280 }
  0x7d   :  { %239 = vbcast.lane.b32.xlu1 %v237_v34, 256 }
  0x80   :  { %243 = vbcast.lane.b32.xlu0 %v237_v34, 264 }
  0x81   :  { %247 = vbcast.lane.b32.xlu1 %v237_v34, 272 }
  0x84   :  { %251 = vbcast.lane.b32.xlu0 %v237_v34, 280 }
  0x85   :  { %258 = vbcast.lane.b32.xlu1 %v256_v49, 256 }
  0x88   :  { %262 = vbcast.lane.b32.xlu0 %v256_v49, 264 }
  0x89   :  { %266 = vbcast.lane.b32.xlu1 %v256_v49, 272 }
  0x8c   :  { %270 = vbcast.lane.b32.xlu0 %v256_v49, 280  ;;  %v1064_v49 = vld [vmem:[%s1202_s2 + $0x8] sm:$0xff]  ;;  %s827_s2 = scalar_lea.vmem %s719_s22, 256 }
  0x8d   :  { %277 = vbcast.lane.b32.xlu1 %v275_v35, 256  ;;  %p828_p2 = scmp.ne.s32.totalorder %s719_s22, %s827_s2  ;;  %p833_p4 = scmp.lt.s32.totalorder %s827_s2, %s827_s2 }
  0x8f   :  { %p834_p5 = por %p833_p4, %p832_p3 }
  0x90   :  { %281 = vbcast.lane.b32.xlu0 %v275_v35, 264 }
  0x91   :  { %285 = vbcast.lane.b32.xlu1 %v275_v35, 272  ;;  %p835_p6 = pnand %p834_p5, %p828_p2 }
  0x94   :  { %289 = vbcast.lane.b32.xlu0 %v275_v35, 280 }
  0x95   :  { %296 = vbcast.lane.b32.xlu1 %v294_v36, 256 }
  0x98   :  { %300 = vbcast.lane.b32.xlu0 %v294_v36, 264 }
  0x99   :  { %304 = vbcast.lane.b32.xlu1 %v294_v36, 272 }
  0x9c   :  { %308 = vbcast.lane.b32.xlu0 %v294_v36, 280  ;;  %v1052_v36 = vrot.slane %v1046_v30, %v972_v13 }
  0x9d   :  { %315 = vbcast.lane.b32.xlu1 %v986_v38, 256 }
  0xa0   :  { %319 = vbcast.lane.b32.xlu0 %v986_v38, 264 }
  0xa1   :  { %323 = vbcast.lane.b32.xlu1 %v986_v38, 272 }
  0xa4   :  { %327 = vbcast.lane.b32.xlu0 %v986_v38, 280 }
  0xa5   :  { %334 = vbcast.lane.b32.xlu1 %v988_v39, 256 }
  0xa8   :  { %338 = vbcast.lane.b32.xlu0 %v988_v39, 264 }
  0xa9   :  { %342 = vbcast.lane.b32.xlu1 %v988_v39, 272 }
  0xab   :  { %v107_v58 = vpop.permute.xlu1 %106 }
  0xac   :  { %346 = vbcast.lane.b32.xlu0 %v988_v39, 280  ;;  %v585_v59 = vmul.f32 %v508_v57, %v107_v58 }
  0xad   :  { %353 = vbcast.lane.b32.xlu1 %v990_v40, 256 }
  0xae   :  { %601 = vst.msk [vmem:[#allocation8] sm:$0xff] %vm98_vm5, %v585_v59 }
  0xaf   :  { %v111_v61 = vpop.permute.xlu1 %110 }
  0xb0   :  { %357 = vbcast.lane.b32.xlu0 %v990_v40, 264  ;;  %v617_v62 = vmul.f32 %v508_v57, %v111_v61 }
  0xb1   :  { %361 = vbcast.lane.b32.xlu1 %v990_v40, 272 }
  0xb2   :  { %633 = vst.msk [vmem:[#allocation8 + $0x8] sm:$0xff] %vm98_vm5, %v617_v62 }
  0xb3   :  { %v119_v0 = vpop.permute.xlu1 %118 }
  0xb4   :  { %365 = vbcast.lane.b32.xlu0 %v990_v40, 280  ;;  %v681_v1 = vmul.f32 %v508_v57, %v119_v0 }
  0xb5   :  { %372 = vbcast.lane.b32.xlu1 %v992_v41, 256 }
  0xb6   :  { %697 = vst.msk [vmem:[#allocation8 + $0x18] sm:$0xff] %vm98_vm5, %v681_v1  ;;  %v453_v1 = vcombine.high %v1046_v30, %v1046_v30 }
  0xb7   :  { %v126_v3 = vpop.permute.xlu1 %125 }
  0xb8   :  { %376 = vbcast.lane.b32.xlu0 %v992_v41, 264  ;;  %v586_v4 = vmul.f32 %v512_v2, %v126_v3 }
  0xb9   :  { %380 = vbcast.lane.b32.xlu1 %v992_v41, 272 }
  0xba   :  { %602 = vst.msk [vmem:[#allocation8 + $0x20] sm:$0xff] %vm98_vm5, %v586_v4 }
  0xbb   :  { %v130_v5 = vpop.permute.xlu1 %129 }
  0xbc   :  { %384 = vbcast.lane.b32.xlu0 %v992_v41, 280  ;;  %v618_v6 = vmul.f32 %v512_v2, %v130_v5 }
  0xbd   :  { %391 = vbcast.lane.b32.xlu1 %v994_v43, 256 }
  0xbe   :  { %634 = vst.msk [vmem:[#allocation8 + $0x28] sm:$0xff] %vm98_vm5, %v618_v6 }
  0xbf   :  { %v134_v7 = vpop.permute.xlu1 %133 }
  0xc0   :  { %395 = vbcast.lane.b32.xlu0 %v994_v43, 264  ;;  %v650_v8 = vmul.f32 %v512_v2, %v134_v7 }
  0xc1   :  { %399 = vbcast.lane.b32.xlu1 %v994_v43, 272 }
  0xc2   :  { %666 = vst.msk [vmem:[#allocation8 + $0x30] sm:$0xff] %vm98_vm5, %v650_v8 }
  0xc3   :  { %v138_v10 = vpop.permute.xlu1 %137 }
  0xc4   :  { %403 = vbcast.lane.b32.xlu0 %v994_v43, 280  ;;  %v682_v11 = vmul.f32 %v512_v2, %v138_v10 }
  0xc6   :  { %698 = vst.msk [vmem:[#allocation8 + $0x38] sm:$0xff] %vm98_vm5, %v682_v11 }
  0xc7   :  { %v78_v14 = vpop.xlane.xlu0 %77  ;;  %v145_v15 = vpop.permute.xlu1 %144 }
  0xc8   :  { %v82_v16 = vadd.f32 1e-06, %v78_v14  ;;  %v587_v17 = vmul.f32 %v516_v12, %v145_v15  ;;  %v94_v47 = vmul.f32 %v78_v14, %v1004_v54  ;;  %v528_v54 = vrot.slane %v1058_v45, %v972_v13 }
  0xca   :  { %779 = vrcp.f32 %v82_v16  ;;  %603 = vst.msk [vmem:[#allocation8 + $0x40] sm:$0xff] %vm98_vm5, %v587_v17 }
  0xcb   :  { %v81_v20 = vpop.xlane.xlu0 %80  ;;  %v153_v21 = vpop.permute.xlu1 %152 }
  0xcc   :  { %v83_v22 = vadd.f32 1e-06, %v81_v20  ;;  %v651_v23 = vmul.f32 %v516_v12, %v153_v21  ;;  %v95_v59 = vmul.f32 %v81_v20, %v1064_v49 }
  0xce   :  { %781 = vrcp.f32 %v83_v22  ;;  %667 = vst.msk [vmem:[#allocation8 + $0x50] sm:$0xff] %vm98_vm5, %v651_v23 }
  0xcf   :  { %v115_v26 = vpop.permute.xlu0 %114  ;;  %v164_v27 = vpop.permute.xlu1 %163 }
  0xd0   :  { %v649_v28 = vmul.f32 %v508_v57, %v115_v26  ;;  %v588_v29 = vmul.f32 %v520_v24, %v164_v27 }
  0xd2   :  { %665 = vst.msk [vmem:[#allocation8 + $0x10] sm:$0xff] %vm98_vm5, %v649_v28  ;;  %604 = vst.msk [vmem:[#allocation8 + $0x60] sm:$0xff] %vm98_vm5, %v588_v29 }
  0xd3   :  { %v149_v31 = vpop.permute.xlu0 %148  ;;  %v172_v32 = vpop.permute.xlu1 %171 }
  0xd4   :  { %v780_v33 = vpop.eup %779  ;;  %v619_v34 = vmul.f32 %v516_v12, %v149_v31  ;;  %v652_v35 = vmul.f32 %v520_v24, %v172_v32 }
  0xd5   :  { %v86_v38 = vmul.f32 %v780_v33, %v82_v16 }
  0xd6   :  { %635 = vst.msk [vmem:[#allocation8 + $0x48] sm:$0xff] %vm98_vm5, %v619_v34  ;;  %668 = vst.msk [vmem:[#allocation8 + $0x70] sm:$0xff] %vm98_vm5, %v652_v35 }
  0xd7   :  { %v88_v39 = vsub.f32 2.0, %v86_v38  ;;  %v157_v40 = vpop.permute.xlu0 %156  ;;  %v183_v41 = vpop.permute.xlu1 %182 }
  0xd8   :  { %v782_v42 = vpop.eup %781  ;;  %v683_v43 = vmul.f32 %v516_v12, %v157_v40  ;;  %v589_v44 = vmul.f32 %v1052_v36, %v183_v41 }
  0xd9   :  { %v90_v46 = vmul.f32 %v780_v33, %v88_v39  ;;  %v87_v48 = vmul.f32 %v782_v42, %v83_v22 }
  0xda   :  { %699 = vst.msk [vmem:[#allocation8 + $0x58] sm:$0xff] %vm98_vm5, %v683_v43  ;;  %605 = vst.msk [vmem:[#allocation8 + $0x80] sm:$0xff] %vm98_vm5, %v589_v44 }
  0xdb   :  { %v96_v50 = vmul.f32 %v94_v47, %v90_v46  ;;  %v89_v51 = vsub.f32 2.0, %v87_v48  ;;  %v168_v52 = vpop.permute.xlu0 %167  ;;  %v191_v55 = vpop.permute.xlu1 %190 }
  0xdc   :  { %v620_v56 = vmul.f32 %v520_v24, %v168_v52  ;;  %v653_v57 = vmul.f32 %v1052_v36, %v191_v55 }
  0xdd   :  { %99 = vst.msk [vmem:[#allocation7] sm:$0xff] %vm98_vm5, %v96_v50  ;;  %v91_v58 = vmul.f32 %v782_v42, %v89_v51 }
  0xde   :  { %636 = vst.msk [vmem:[#allocation8 + $0x68] sm:$0xff] %vm98_vm5, %v620_v56  ;;  %669 = vst.msk [vmem:[#allocation8 + $0x90] sm:$0xff] %vm98_vm5, %v653_v57 }
  0xdf   :  { %v97_v60 = vmul.f32 %v95_v59, %v91_v58  ;;  %v176_v61 = vpop.permute.xlu0 %175  ;;  %v202_v62 = vpop.permute.xlu1 %201 }
  0xe0   :  { %v684_v63 = vmul.f32 %v520_v24, %v176_v61  ;;  %v590_v0 = vmul.f32 %v528_v54, %v202_v62 }
  0xe1   :  { %100 = vst.msk [vmem:[#allocation7 + $0x8] sm:$0xff] %vm98_vm5, %v97_v60 }
  0xe2   :  { %700 = vst.msk [vmem:[#allocation8 + $0x78] sm:$0xff] %vm98_vm5, %v684_v63  ;;  %606 = vst.msk [vmem:[#allocation8 + $0xa0] sm:$0xff] %vm98_vm5, %v590_v0 }
  0xe3   :  { %838 = shalt.err (!%p835_p6)
}
  0xe4   :  { %s839_s25 = scalar_lea.hbm %s1203_s3, 256 }
  0xe5   :  { %p840_p7 = scmp.ne.s32.totalorder %s1203_s3, %s839_s25  ;;  %p843_p8 = scmp.lt.u32.totalorder %s839_s25, %s1203_s3 }
  0xe7   :  { %p845_p9 = pnand %p843_p8, %p840_p7 }
  0xe9   :  { %848 = shalt.err (!%p845_p9)
}
  0xea   :  { %724 = dma.vmem_to_hbm [thread:$0]  %s719_s22, 256, %s1203_s3, [#allocation4], %s902_s28, %s902_s28, %s903_s29   ;;  %v187_v2 = vpop.permute.xlu0 %186  ;;  %v210_v3 = vpop.permute.xlu1 %209  ;;  %v532_v6 = vrot.slane %v453_v1, %v972_v13  ;;  %v455_v11 = vcombine.high %v1058_v45, %v1058_v45  ;;  %v463_v15 = vrot.slane %v1064_v49, %v998_v53  ;;  %v456_v55 = vcombine.high %v1064_v49, %v1064_v49 }
  0xeb   :  { %v621_v4 = vmul.f32 %v1052_v36, %v187_v2  ;;  %v654_v5 = vmul.f32 %v528_v54, %v210_v3  ;;  %s907_s3 = smov [#allocation8]   ;;  %s908_s10 = smov [#allocation10]  }
  0xec   :  { %v536_v18 = vrot.slane %v455_v11, %v972_v13  ;;  %v479_v21 = vrot.slane %v463_v15, %v998_v53  ;;  %v471_v26 = vcombine.high %v463_v15, %v463_v15  ;;  %v470_v60 = vrot.slane %v456_v55, %v998_v53  ;;  %s730_s9 = sshll.u32 %s907_s3, 4  ;;  %s742_s11 = sshll.u32 %s908_s10, 4  ;;  %s731_s9 = int_to_ptr.vmem [resolvable:$true] %s730_s9  ;;  %s1162_s11 = int_to_ptr.vmem [resolvable:$true] %s742_s11 }
  0xed   :  { %637 = vst.msk [vmem:[#allocation8 + $0x88] sm:$0xff] %vm98_vm5, %v621_v4  ;;  %670 = vst.msk [vmem:[#allocation8 + $0xb0] sm:$0xff] %vm98_vm5, %v654_v5  ;;  %s849_s12 = scalar_lea.vmem %s731_s9, 8192  ;;  %p854_p11 = scmp.lt.s32.totalorder %s731_s9, %s731_s9 }
  0xee   :  { %v195_v7 = vpop.permute.xlu0 %194  ;;  %v221_v8 = vpop.permute.xlu1 %220  ;;  %v540_v29 = vrot.slane %v479_v21, %v972_v13  ;;  %v493_v32 = vrot.slane %v471_v26, %v998_v53  ;;  %v501_v42 = vcombine.high %v479_v21, %v479_v21  ;;  %v486_v1 = vrot.slane %v470_v60, %v998_v53  ;;  %p850_p10 = scmp.ne.s32.totalorder %s731_s9, %s849_s12  ;;  %p855_p12 = scmp.lt.s32.totalorder %s849_s12, %s849_s12 }
  0xef   :  { %v685_v9 = vmul.f32 %v1052_v36, %v195_v7  ;;  %v591_v10 = vmul.f32 %v532_v6, %v221_v8 }
  0xf0   :  { %v544_v39 = vrot.slane %v493_v32, %v972_v13  ;;  %v548_v50 = vrot.slane %v501_v42, %v972_v13  ;;  %p856_p13 = por %p855_p12, %p854_p11 }
  0xf1   :  { %701 = vst.msk [vmem:[#allocation8 + $0x98] sm:$0xff] %vm98_vm5, %v685_v9  ;;  %607 = vst.msk [vmem:[#allocation8 + $0xc0] sm:$0xff] %vm98_vm5, %v591_v10  ;;  %v556_v9 = vrot.slane %v486_v1, %v972_v13 }
  0xf2   :  { %v206_v12 = vpop.permute.xlu0 %205  ;;  %v229_v14 = vpop.permute.xlu1 %228  ;;  %p857_p0 = pnand %p856_p13, %p850_p10 }
  0xf3   :  { %v622_v16 = vmul.f32 %v528_v54, %v206_v12  ;;  %v655_v17 = vmul.f32 %v532_v6, %v229_v14 }
  0xf5   :  { %638 = vst.msk [vmem:[#allocation8 + $0xa8] sm:$0xff] %vm98_vm5, %v622_v16  ;;  %671 = vst.msk [vmem:[#allocation8 + $0xd0] sm:$0xff] %vm98_vm5, %v655_v17 }
  0xf6   :  { %v214_v19 = vpop.permute.xlu0 %213  ;;  %v240_v20 = vpop.permute.xlu1 %239 }
  0xf7   :  { %v686_v22 = vmul.f32 %v528_v54, %v214_v19  ;;  %v592_v23 = vmul.f32 %v536_v18, %v240_v20  ;;  %v503_v54 = vcombine.high %v493_v32, %v493_v32 }
  0xf9   :  { %702 = vst.msk [vmem:[#allocation8 + $0xb8] sm:$0xff] %vm98_vm5, %v686_v22  ;;  %608 = vst.msk [vmem:[#allocation8 + $0xe0] sm:$0xff] %vm98_vm5, %v592_v23  ;;  %v552_v63 = vrot.slane %v503_v54, %v972_v13 }
  0xfa   :  { %v225_v24 = vpop.permute.xlu0 %224  ;;  %v248_v25 = vpop.permute.xlu1 %247 }
  0xfb   :  { %v623_v27 = vmul.f32 %v532_v6, %v225_v24  ;;  %v656_v28 = vmul.f32 %v536_v18, %v248_v25  ;;  %v502_v25 = vcombine.high %v486_v1, %v486_v1 }
  0xfd   :  { %639 = vst.msk [vmem:[#allocation8 + $0xc8] sm:$0xff] %vm98_vm5, %v623_v27  ;;  %672 = vst.msk [vmem:[#allocation8 + $0xf0] sm:$0xff] %vm98_vm5, %v656_v28 }
  0xfe   :  { %v233_v30 = vpop.permute.xlu0 %232  ;;  %v259_v31 = vpop.permute.xlu1 %258 }
  0xff   :  { %v687_v33 = vmul.f32 %v532_v6, %v233_v30  ;;  %v593_v34 = vmul.f32 %v540_v29, %v259_v31  ;;  %v472_v6 = vcombine.high %v470_v60, %v470_v60 }
 0x101   :  { %703 = vst.msk [vmem:[#allocation8 + $0xd8] sm:$0xff] %vm98_vm5, %v687_v33  ;;  %609 = vst.msk [vmem:[#allocation8 + $0x100] sm:$0xff] %vm98_vm5, %v593_v34  ;;  %v500_v15 = vrot.slane %v472_v6, %v998_v53 }
 0x102   :  { %v244_v35 = vpop.permute.xlu0 %243  ;;  %v267_v36 = vpop.permute.xlu1 %266 }
 0x103   :  { %v624_v37 = vmul.f32 %v536_v18, %v244_v35  ;;  %v657_v38 = vmul.f32 %v540_v29, %v267_v36  ;;  %v560_v20 = vrot.slane %v500_v15, %v972_v13  ;;  %v504_v34 = vcombine.high %v500_v15, %v500_v15 }
 0x105   :  { %640 = vst.msk [vmem:[#allocation8 + $0xe8] sm:$0xff] %vm98_vm5, %v624_v37  ;;  %673 = vst.msk [vmem:[#allocation8 + $0x110] sm:$0xff] %vm98_vm5, %v657_v38 }
 0x106   :  { %v252_v40 = vpop.permute.xlu0 %251  ;;  %v278_v41 = vpop.permute.xlu1 %277 }
 0x107   :  { %v688_v43 = vmul.f32 %v536_v18, %v252_v40  ;;  %v594_v44 = vmul.f32 %v544_v39, %v278_v41 }
 0x109   :  { %704 = vst.msk [vmem:[#allocation8 + $0xf8] sm:$0xff] %vm98_vm5, %v688_v43  ;;  %610 = vst.msk [vmem:[#allocation8 + $0x120] sm:$0xff] %vm98_vm5, %v594_v44 }
 0x10a   :  { %v263_v45 = vpop.permute.xlu0 %262  ;;  %v286_v46 = vpop.permute.xlu1 %285 }
 0x10b   :  { %v625_v47 = vmul.f32 %v540_v29, %v263_v45  ;;  %v658_v48 = vmul.f32 %v544_v39, %v286_v46 }
 0x10d   :  { %641 = vst.msk [vmem:[#allocation8 + $0x108] sm:$0xff] %vm98_vm5, %v625_v47  ;;  %674 = vst.msk [vmem:[#allocation8 + $0x130] sm:$0xff] %vm98_vm5, %v658_v48 }
 0x10e   :  { %v271_v51 = vpop.permute.xlu0 %270  ;;  %v297_v52 = vpop.permute.xlu1 %296 }
 0x10f   :  { %v689_v56 = vmul.f32 %v540_v29, %v271_v51  ;;  %v595_v57 = vmul.f32 %v548_v50, %v297_v52  ;;  %v564_v29 = vrot.slane %v502_v25, %v972_v13 }
 0x111   :  { %705 = vst.msk [vmem:[#allocation8 + $0x118] sm:$0xff] %vm98_vm5, %v689_v56  ;;  %611 = vst.msk [vmem:[#allocation8 + $0x140] sm:$0xff] %vm98_vm5, %v595_v57 }
 0x112   :  { %v282_v58 = vpop.permute.xlu0 %281  ;;  %v305_v59 = vpop.permute.xlu1 %304 }
 0x113   :  { %v626_v61 = vmul.f32 %v544_v39, %v282_v58  ;;  %v659_v62 = vmul.f32 %v548_v50, %v305_v59 }
 0x115   :  { %642 = vst.msk [vmem:[#allocation8 + $0x128] sm:$0xff] %vm98_vm5, %v626_v61  ;;  %675 = vst.msk [vmem:[#allocation8 + $0x150] sm:$0xff] %vm98_vm5, %v659_v62 }
 0x116   :  { %v290_v49 = vpop.permute.xlu0 %289  ;;  %v316_v0 = vpop.permute.xlu1 %315 }
 0x117   :  { %v690_v2 = vmul.f32 %v544_v39, %v290_v49  ;;  %v596_v3 = vmul.f32 %v552_v63, %v316_v0  ;;  %v568_v39 = vrot.slane %v504_v34, %v972_v13 }
 0x119   :  { %706 = vst.msk [vmem:[#allocation8 + $0x138] sm:$0xff] %vm98_vm5, %v690_v2  ;;  %612 = vst.msk [vmem:[#allocation8 + $0x160] sm:$0xff] %vm98_vm5, %v596_v3 }
 0x11a   :  { %v301_v4 = vpop.permute.xlu0 %300  ;;  %v324_v5 = vpop.permute.xlu1 %323 }
 0x11b   :  { %v627_v7 = vmul.f32 %v548_v50, %v301_v4  ;;  %v660_v8 = vmul.f32 %v552_v63, %v324_v5 }
 0x11d   :  { %643 = vst.msk [vmem:[#allocation8 + $0x148] sm:$0xff] %vm98_vm5, %v627_v7  ;;  %676 = vst.msk [vmem:[#allocation8 + $0x170] sm:$0xff] %vm98_vm5, %v660_v8 }
 0x11e   :  { %v309_v10 = vpop.permute.xlu0 %308  ;;  %v335_v11 = vpop.permute.xlu1 %334 }
 0x11f   :  { %v691_v12 = vmul.f32 %v548_v50, %v309_v10  ;;  %v597_v14 = vmul.f32 %v556_v9, %v335_v11 }
 0x121   :  { %707 = vst.msk [vmem:[#allocation8 + $0x158] sm:$0xff] %vm98_vm5, %v691_v12  ;;  %613 = vst.msk [vmem:[#allocation8 + $0x180] sm:$0xff] %vm98_vm5, %v597_v14 }
 0x122   :  { %v320_v16 = vpop.permute.xlu0 %319  ;;  %v343_v17 = vpop.permute.xlu1 %342 }
 0x123   :  { %v628_v18 = vmul.f32 %v552_v63, %v320_v16  ;;  %v661_v19 = vmul.f32 %v556_v9, %v343_v17 }
 0x125   :  { %644 = vst.msk [vmem:[#allocation8 + $0x168] sm:$0xff] %vm98_vm5, %v628_v18  ;;  %677 = vst.msk [vmem:[#allocation8 + $0x190] sm:$0xff] %vm98_vm5, %v661_v19 }
 0x126   :  { %v328_v21 = vpop.permute.xlu0 %327  ;;  %v354_v22 = vpop.permute.xlu1 %353 }
 0x127   :  { %v692_v23 = vmul.f32 %v552_v63, %v328_v21  ;;  %v598_v24 = vmul.f32 %v560_v20, %v354_v22 }
 0x129   :  { %708 = vst.msk [vmem:[#allocation8 + $0x178] sm:$0xff] %vm98_vm5, %v692_v23  ;;  %614 = vst.msk [vmem:[#allocation8 + $0x1a0] sm:$0xff] %vm98_vm5, %v598_v24 }
 0x12a   :  { %v339_v53 = vpop.permute.xlu0 %338  ;;  %v362_v26 = vpop.permute.xlu1 %361 }
 0x12b   :  { %v629_v27 = vmul.f32 %v556_v9, %v339_v53  ;;  %v662_v28 = vmul.f32 %v560_v20, %v362_v26 }
 0x12d   :  { %645 = vst.msk [vmem:[#allocation8 + $0x188] sm:$0xff] %vm98_vm5, %v629_v27  ;;  %678 = vst.msk [vmem:[#allocation8 + $0x1b0] sm:$0xff] %vm98_vm5, %v662_v28 }
 0x12e   :  { %v347_v30 = vpop.permute.xlu0 %346  ;;  %v373_v31 = vpop.permute.xlu1 %372 }
 0x12f   :  { %v693_v32 = vmul.f32 %v556_v9, %v347_v30  ;;  %v599_v33 = vmul.f32 %v564_v29, %v373_v31 }
 0x131   :  { %709 = vst.msk [vmem:[#allocation8 + $0x198] sm:$0xff] %vm98_vm5, %v693_v32  ;;  %615 = vst.msk [vmem:[#allocation8 + $0x1c0] sm:$0xff] %vm98_vm5, %v599_v33 }
 0x132   :  { %v358_v35 = vpop.permute.xlu0 %357  ;;  %v381_v36 = vpop.permute.xlu1 %380 }
 0x133   :  { %v630_v37 = vmul.f32 %v560_v20, %v358_v35  ;;  %v663_v38 = vmul.f32 %v564_v29, %v381_v36 }
 0x135   :  { %646 = vst.msk [vmem:[#allocation8 + $0x1a8] sm:$0xff] %vm98_vm5, %v630_v37  ;;  %679 = vst.msk [vmem:[#allocation8 + $0x1d0] sm:$0xff] %vm98_vm5, %v663_v38 }
 0x136   :  { %v366_v40 = vpop.permute.xlu0 %365  ;;  %v392_v41 = vpop.permute.xlu1 %391 }
 0x137   :  { %v694_v42 = vmul.f32 %v560_v20, %v366_v40  ;;  %v600_v43 = vmul.f32 %v568_v39, %v392_v41 }
 0x139   :  { %710 = vst.msk [vmem:[#allocation8 + $0x1b8] sm:$0xff] %vm98_vm5, %v694_v42  ;;  %616 = vst.msk [vmem:[#allocation8 + $0x1e0] sm:$0xff] %vm98_vm5, %v600_v43 }
 0x13a   :  { %v377_v44 = vpop.permute.xlu0 %376  ;;  %v400_v45 = vpop.permute.xlu1 %399 }
 0x13b   :  { %v631_v46 = vmul.f32 %v564_v29, %v377_v44  ;;  %v664_v47 = vmul.f32 %v568_v39, %v400_v45 }
 0x13d   :  { %647 = vst.msk [vmem:[#allocation8 + $0x1c8] sm:$0xff] %vm98_vm5, %v631_v46  ;;  %680 = vst.msk [vmem:[#allocation8 + $0x1f0] sm:$0xff] %vm98_vm5, %v664_v47 }
 0x13e   :  { %v385_v13 = vpop.permute.xlu0 %384 }
 0x13f   :  { %v695_v48 = vmul.f32 %v564_v29, %v385_v13 }
 0x141   :  { %711 = vst.msk [vmem:[#allocation8 + $0x1d8] sm:$0xff] %vm98_vm5, %v695_v48 }
 0x142   :  { %v396_v50 = vpop.permute.xlu0 %395 }
 0x143   :  { %v632_v51 = vmul.f32 %v568_v39, %v396_v50 }
 0x145   :  { %648 = vst.msk [vmem:[#allocation8 + $0x1e8] sm:$0xff] %vm98_vm5, %v632_v51 }
 0x146   :  { %v404_v52 = vpop.permute.xlu0 %403 }
 0x147   :  { %v696_v55 = vmul.f32 %v568_v39, %v404_v52 }
 0x149   :  { %712 = vst.msk [vmem:[#allocation8 + $0x1f8] sm:$0xff] %vm98_vm5, %v696_v55 }
 0x14a   :  { %860 = shalt.err (!%p857_p0)
}
 0x14b   :  { %s861_s15 = scalar_lea.hbm %s1204_s4, 8192 }
 0x14c   :  { %p862_p1 = scmp.ne.s32.totalorder %s1204_s4, %s861_s15  ;;  %p865_p2 = scmp.lt.u32.totalorder %s861_s15, %s1204_s4 }
 0x14e   :  { %p867_p3 = pnand %p865_p2, %p862_p1 }
 0x150   :  { %870 = shalt.err (!%p867_p3)
}
 0x151   :  { %736 = dma.vmem_to_hbm [thread:$0]  %s731_s9, 8192, %s1204_s4, [#allocation9], %s902_s28, %s902_s28, %s903_s29  }
 0x152   :  { %s871_s20 = scalar_lea.vmem %s1162_s11, 256  ;;  %p876_p5 = scmp.lt.s32.totalorder %s1162_s11, %s1162_s11 }
 0x153   :  { %p872_p4 = scmp.ne.s32.totalorder %s1162_s11, %s871_s20  ;;  %p877_p6 = scmp.lt.s32.totalorder %s871_s20, %s871_s20 }
 0x155   :  { %p878_p7 = por %p877_p6, %p876_p5 }
 0x157   :  { %p879_p8 = pnand %p878_p7, %p872_p4 }
 0x159   :  { %882 = shalt.err (!%p879_p8)
}
 0x15a   :  { %s883_s2 = scalar_lea.hbm %s1205_s5, 256 }
 0x15b   :  { %p884_p9 = scmp.ne.s32.totalorder %s1205_s5, %s883_s2  ;;  %p887_p10 = scmp.lt.u32.totalorder %s883_s2, %s1205_s5 }
 0x15d   :  { %p889_p11 = pnand %p887_p10, %p884_p9 }
 0x15f   :  { %892 = shalt.err (!%p889_p11)
}
 0x160   :  { %748 = dma.vmem_to_hbm [thread:$0]  %s1162_s11, 256, %s1205_s5, [#allocation9], %s902_s28, %s902_s28, %s903_s29  }
 0x161   :  { %897 = dma.done.wait [#allocation4], 256  }
 0x162   :  { %898 = vsyncadd [#allocation4], 4294967040 }
 0x163   :  { %899 = dma.done.wait [#allocation9], 8448  }
 0x164   :  { %900 = vsyncadd [#allocation9], 4294958848 }
 0x165   :  { %758 = vsyncpa [#allocation3], 1 }
 0x166   :  { %759 = vsyncpa [#allocation6], 1 }
 0x167   :  { %760 = vsyncpa [#allocation4], 1 }
 0x168   :  { %761 = vsyncpa [#allocation9], 1 }

</bundles_post_ra>
